<compile_context>
chip_gen: v5e
topology: v5e:2x2
jax: 0.10.0
libtpu: 0.0.40
codegen_flags: <defaults>
</compile_context>

<pallas_src>
import functools

import jax
import jax.numpy as jnp
import numpy as np
from jax.experimental import pallas as pl
from jax.experimental.pallas import tpu as pltpu


# ---------------------------------------------------------------------------
# Model configuration helpers (plain Python / JAX glue)
# ---------------------------------------------------------------------------
def get_hidden_layer_sizes(in_size, out_size, n_hidden):
    # TODO(synk): get_hidden_layer_sizes is not in the reference source; use a
    # deterministic rounded linear interpolation (matches the decoder's
    # constant case exactly).
    if n_hidden <= 0:
        return []
    pts = np.linspace(in_size, out_size, n_hidden + 2)[1:-1]
    return [int(round(p)) for p in pts]


def build_mlp_layer_sizes(n_features, embedding_dim, n_layer):
    """(encoder_layer_sizes, decoder_layer_sizes) exactly as DNN_AE builds them."""
    enc_hidden = get_hidden_layer_sizes(n_features, embedding_dim, n_layer - 1)
    enc_sizes = [n_features] + enc_hidden + [embedding_dim]
    dec_hidden = get_hidden_layer_sizes(n_features, n_features, n_layer - 1)
    dec_sizes = [embedding_dim] + dec_hidden + [n_features]
    return enc_sizes, dec_sizes


def init_linear_params(key, layer_sizes):
    """PyTorch-style uniform init (deterministic). Weights stored as (in, out)."""
    params = []
    for in_size, out_size in zip(layer_sizes[:-1], layer_sizes[1:]):
        key, kw, kb = jax.random.split(key, 3)
        bound = 1.0 / np.sqrt(in_size)
        w = jax.random.uniform(kw, (in_size, out_size), jnp.float32, -bound, bound)
        b = jax.random.uniform(kb, (1, out_size), jnp.float32, -bound, bound)
        params.append((w, b))
    return key, params


def _round_up(n, m):
    return ((n + m - 1) // m) * m


def _cdiv(a, b):
    return -(-a // b)


def compose_no_activation_seams(params, act_flags):
    """Fold every linear layer that is followed immediately by another linear
    layer with no activation in between:  (x@W1+b1)@W2+b2 == x@(W1@W2)+(b1@W2+b2).
    Done once, in f32, at parameter-build time."""
    out_params, out_flags = [], []
    i = 0
    while i < len(params):
        w, b = params[i]
        a = bool(act_flags[i])
        while (not a) and (i + 1 < len(params)):
            w2, b2 = params[i + 1]
            w = jnp.dot(w, w2, preferred_element_type=jnp.float32)
            b = jnp.dot(b, w2, preferred_element_type=jnp.float32) + b2
            a = bool(act_flags[i + 1])
            i += 1
        out_params.append((w, b))
        out_flags.append(a)
        i += 1
    return out_params, out_flags


def _choose_row_tiling(m, tm_target):
    """Pick (tm, n_steps, m_pad): tm multiple of 8, >=2 grid steps when M allows
    (v7x megacore), and pad waste bounded by < 8 rows per step."""
    if m >= 16:
        n_steps = max(_cdiv(m, tm_target), 2)
    else:
        n_steps = 1
    tm = _round_up(_cdiv(m, n_steps), 8)
    m_pad = tm * n_steps
    return tm, n_steps, m_pad


# ---------------------------------------------------------------------------
# Pallas kernel: fully fused encoder+decoder MLP chain on a (TM, feat) row tile
# ---------------------------------------------------------------------------
def _fused_ae_kernel(*refs, act_flags):
    # refs = (x_ref, w0, b0, w1, b1, ..., o_ref).
    # x/out are native feature width; internal widths are 128-lane padded.
    x_ref = refs[0]
    o_ref = refs[-1]
    param_refs = refs[1:-1]
    n_layers = len(param_refs) // 2

    y = x_ref[...]                                   # (TM, f_in), streamed dtype
    for i in range(n_layers):
        w = param_refs[2 * i][...]                   # bf16, VMEM-resident
        b = param_refs[2 * i + 1][...]               # f32
        # bf16 MXU matmul, f32 accumulation.
        y = jnp.dot(y.astype(w.dtype), w, preferred_element_type=jnp.float32) + b
        if act_flags[i]:                             # LeakyReLU(0.2)
            y = jnp.where(y > 0, y, 0.2 * y)
    o_ref[...] = y.astype(o_ref.dtype)


def fused_autoencoder(x2d, params, act_flags, *, tm=1024,
                      param_dtype=jnp.bfloat16, fuse_linear_seams=True):
    """x2d: (M, f_in). params: list of (w (in,out) f32, b (1,out) f32)."""
    m, f_in = x2d.shape
    out_dtype = x2d.dtype

    # --- fold activation-free seams (encoder tail -> decoder head) ----------
    if fuse_linear_seams:
        params, act_flags = compose_no_activation_seams(params, act_flags)
    f_out = params[-1][0].shape[1]

    # --- widths: first/last stay native, internal widths padded to 128 ------
    widths = [params[0][0].shape[0]] + [w.shape[1] for w, _ in params]
    assert widths[0] == f_in
    pwidths = list(widths)
    for li in range(1, len(widths) - 1):
        pwidths[li] = _round_up(widths[li], 128)

    padded_flat = []
    for li, (w, b) in enumerate(params):
        pi, po = pwidths[li], pwidths[li + 1]
        wp = jnp.zeros((pi, po), param_dtype).at[: w.shape[0], : w.shape[1]].set(
            w.astype(param_dtype))
        bp = jnp.zeros((1, po), jnp.float32).at[:, : b.shape[1]].set(b)
        padded_flat.extend([wp, bp])

    # --- row tiling: >=2 steps when possible, bounded pad waste -------------
    tm, n_steps, m_pad = _choose_row_tiling(m, tm)
    if m_pad > m:
        xp = jnp.zeros((m_pad, f_in), x2d.dtype).at[:m, :].set(x2d)
    else:
        xp = x2d

    grid = (n_steps,)
    x_spec = pl.BlockSpec((tm, f_in), lambda i: (i, 0))       # native lane width
    out_spec = pl.BlockSpec((tm, f_out), lambda i: (i, 0))    # native lane width
    # Weights/biases: full-array blocks, constant index_map -> resident in VMEM.
    param_specs = [pl.BlockSpec(p.shape, lambda i: (0, 0)) for p in padded_flat]

    # --- explicit VMEM budget (params once; streams double-buffered) --------
    param_bytes = sum(int(np.prod(p.shape)) * jnp.dtype(p.dtype).itemsize
                      for p in padded_flat)
    x_tile_bytes = tm * f_in * jnp.dtype(xp.dtype).itemsize
    o_tile_bytes = tm * f_out * jnp.dtype(out_dtype).itemsize
    io_bytes = 2 * (x_tile_bytes + o_tile_bytes)              # double buffers
    act_bytes = 4 * tm * max(pwidths) * 4                     # live f32 activations
    vmem_limit = int(min(32 * 1024 * 1024,
                         max(16 * 1024 * 1024,
                             param_bytes + io_bytes + act_bytes + 4 * 1024 * 1024)))

    kernel = functools.partial(_fused_ae_kernel, act_flags=tuple(act_flags))
    yp = pl.pallas_call(
        kernel,
        out_shape=jax.ShapeDtypeStruct((m_pad, f_out), out_dtype),
        grid=grid,
        in_specs=[x_spec] + param_specs,
        out_specs=out_spec,
        compiler_params=pltpu.CompilerParams(
            dimension_semantics=("parallel",),
            vmem_limit_bytes=vmem_limit,
        ),
    )(xp, *padded_flat)

    return yp[:m] if m_pad > m else yp


# ---------------------------------------------------------------------------
# DNN_AE forward (glue in plain JAX, hot path in the single fused kernel)
# ---------------------------------------------------------------------------
def dnn_ae_forward(x, enc_params, dec_params, batch_size, seq_len,
                   n_features, embedding_dim, *, tm=1024):
    params = list(enc_params) + list(dec_params)
    # LeakyReLU on all hidden layers, no activation on each stack's last layer.
    act_flags = ([True] * (len(enc_params) - 1) + [False]
                 + [True] * (len(dec_params) - 1) + [False])
    x2d = x.reshape(batch_size * seq_len, n_features)
    y2d = fused_autoencoder(x2d, params, act_flags, tm=tm)
    return y2d.reshape(batch_size, seq_len, n_features)


def dnn_ae_forward_ref(x, enc_params, dec_params, batch_size, seq_len,
                       n_features, embedding_dim):
    """Pure-JAX f32 reference (no padding, no fusion, no bf16)."""
    def mlp(y, params, acts):
        for (w, b), a in zip(params, acts):
            y = jnp.dot(y, w, preferred_element_type=jnp.float32) + b
            if a:
                y = jnp.where(y > 0, y, 0.2 * y)
        return y

    x2d = x.reshape(batch_size * seq_len, n_features)
    enc_acts = [True] * (len(enc_params) - 1) + [False]
    dec_acts = [True] * (len(dec_params) - 1) + [False]
    z2d = mlp(x2d, enc_params, enc_acts)
    y2d = mlp(z2d, dec_params, dec_acts)
    return y2d.reshape(batch_size, seq_len, n_features)


if __name__ == "__main__":
    # Small shapes consistent with the module's forward.
    batch_size = 2
    seq_len = 8
    n_features = 16
    embedding_dim = 32
    n_layer = 3  # -> 2 hidden layers per encoder/decoder

    enc_sizes, dec_sizes = build_mlp_layer_sizes(n_features, embedding_dim, n_layer)

    key = jax.random.PRNGKey(0)
    key, enc_params = init_linear_params(key, enc_sizes)
    key, dec_params = init_linear_params(key, dec_sizes)

    key, kx = jax.random.split(key)
    x = jax.random.normal(kx, (batch_size, seq_len, n_features), jnp.float32)

    out = dnn_ae_forward(x, enc_params, dec_params,
                         batch_size, seq_len, n_features, embedding_dim)
    out = jax.block_until_ready(out)

    ref = dnn_ae_forward_ref(x, enc_params, dec_params,
                             batch_size, seq_len, n_features, embedding_dim)
    assert out.shape == (batch_size, seq_len, n_features)
    # Tolerance relaxed vs. pure-f32 reference because the kernel runs its
    # matmuls with bf16 weights/activations (f32 accumulation) and pre-composes
    # the activation-free encoder->decoder seam.
    np.testing.assert_allclose(np.asarray(out, dtype=np.float32),
                               np.asarray(ref, dtype=np.float32),
                               rtol=2e-2, atol=2e-2)

    print("KERNEL_OK")
</pallas_src>

<mosaic_0001>
module attributes {stable_mosaic.version = 11 : i64} {
  func.func @_fused_ae_kernel(%arg0: i32, %arg1: memref<8x16xf32, #tpu.memory_space<vmem>>, %arg2: memref<16x128xbf16, #tpu.memory_space<vmem>>, %arg3: memref<1x128xf32, #tpu.memory_space<vmem>>, %arg4: memref<128x128xbf16, #tpu.memory_space<vmem>>, %arg5: memref<1x128xf32, #tpu.memory_space<vmem>>, %arg6: memref<128x128xbf16, #tpu.memory_space<vmem>>, %arg7: memref<1x128xf32, #tpu.memory_space<vmem>>, %arg8: memref<128x128xbf16, #tpu.memory_space<vmem>>, %arg9: memref<1x128xf32, #tpu.memory_space<vmem>>, %arg10: memref<128x16xbf16, #tpu.memory_space<vmem>>, %arg11: memref<1x16xf32, #tpu.memory_space<vmem>>, %arg12: memref<8x16xf32, #tpu.memory_space<vmem>>) attributes {dimension_semantics = [#tpu.dimension_semantics<parallel>], iteration_bounds = array<i64: 2>, scalar_prefetch = 0 : i64, scratch_operands = 0 : i64, tpu.core_type = #tpu.core_type<tc>, window_params = [{transform_indices = @transform_0, window_bounds = array<i64: 8, 16>}, {pipeline_mode = #tpu.pipeline_mode<synchronous>, transform_indices = @transform_1, window_bounds = array<i64: 16, 128>}, {pipeline_mode = #tpu.pipeline_mode<synchronous>, transform_indices = @transform_2, window_bounds = array<i64: 1, 128>}, {pipeline_mode = #tpu.pipeline_mode<synchronous>, transform_indices = @transform_3, window_bounds = array<i64: 128, 128>}, {pipeline_mode = #tpu.pipeline_mode<synchronous>, transform_indices = @transform_4, window_bounds = array<i64: 1, 128>}, {pipeline_mode = #tpu.pipeline_mode<synchronous>, transform_indices = @transform_5, window_bounds = array<i64: 128, 128>}, {pipeline_mode = #tpu.pipeline_mode<synchronous>, transform_indices = @transform_6, window_bounds = array<i64: 1, 128>}, {pipeline_mode = #tpu.pipeline_mode<synchronous>, transform_indices = @transform_7, window_bounds = array<i64: 128, 128>}, {pipeline_mode = #tpu.pipeline_mode<synchronous>, transform_indices = @transform_8, window_bounds = array<i64: 1, 128>}, {pipeline_mode = #tpu.pipeline_mode<synchronous>, transform_indices = @transform_9, window_bounds = array<i64: 128, 16>}, {pipeline_mode = #tpu.pipeline_mode<synchronous>, transform_indices = @transform_10, window_bounds = array<i64: 1, 16>}, {transform_indices = @transform_11, window_bounds = array<i64: 8, 16>}]} {
    %c0 = arith.constant 0 : index
    %c0_0 = arith.constant 0 : index
    %0 = vector.load %arg1[%c0, %c0_0] : memref<8x16xf32, #tpu.memory_space<vmem>>, vector<8x16xf32>
    %c0_1 = arith.constant 0 : index
    %c0_2 = arith.constant 0 : index
    %1 = vector.load %arg2[%c0_1, %c0_2] : memref<16x128xbf16, #tpu.memory_space<vmem>>, vector<16x128xbf16>
    %c0_3 = arith.constant 0 : index
    %c0_4 = arith.constant 0 : index
    %2 = vector.load %arg3[%c0_3, %c0_4] : memref<1x128xf32, #tpu.memory_space<vmem>>, vector<1x128xf32>
    %3 = arith.truncf %0 : vector<8x16xf32> to vector<8x16xbf16>
    %cst = arith.constant dense<0.000000e+00> : vector<8x128xf32>
    %4 = tpu.matmul %3, %1, %cst {dimension_numbers = #tpu.dot_dimension_numbers<[1], [0], [0], [1], [0, 0, 1, 1], [], []>} : vector<8x16xbf16>, vector<16x128xbf16>, vector<8x128xf32> -> vector<8x128xf32>
    %5 = vector.broadcast %2 : vector<1x128xf32> to vector<8x128xf32>
    %6 = arith.addf %4, %5 : vector<8x128xf32>
    %cst_5 = arith.constant 0.000000e+00 : f32
    %7 = vector.broadcast %cst_5 : f32 to vector<8x128xf32>
    %8 = arith.cmpf ogt, %6, %7 : vector<8x128xf32>
    %cst_6 = arith.constant 2.000000e-01 : f32
    %9 = vector.broadcast %cst_6 : f32 to vector<8x128xf32>
    %10 = arith.mulf %9, %6 : vector<8x128xf32>
    %11 = arith.select %8, %6, %10 : vector<8x128xi1>, vector<8x128xf32>
    %c0_7 = arith.constant 0 : index
    %c0_8 = arith.constant 0 : index
    %12 = vector.load %arg4[%c0_7, %c0_8] : memref<128x128xbf16, #tpu.memory_space<vmem>>, vector<128x128xbf16>
    %c0_9 = arith.constant 0 : index
    %c0_10 = arith.constant 0 : index
    %13 = vector.load %arg5[%c0_9, %c0_10] : memref<1x128xf32, #tpu.memory_space<vmem>>, vector<1x128xf32>
    %14 = arith.truncf %11 : vector<8x128xf32> to vector<8x128xbf16>
    %cst_11 = arith.constant dense<0.000000e+00> : vector<8x128xf32>
    %15 = tpu.matmul %14, %12, %cst_11 {dimension_numbers = #tpu.dot_dimension_numbers<[1], [0], [0], [1], [0, 0, 1, 1], [], []>} : vector<8x128xbf16>, vector<128x128xbf16>, vector<8x128xf32> -> vector<8x128xf32>
    %16 = vector.broadcast %13 : vector<1x128xf32> to vector<8x128xf32>
    %17 = arith.addf %15, %16 : vector<8x128xf32>
    %cst_12 = arith.constant 0.000000e+00 : f32
    %18 = vector.broadcast %cst_12 : f32 to vector<8x128xf32>
    %19 = arith.cmpf ogt, %17, %18 : vector<8x128xf32>
    %cst_13 = arith.constant 2.000000e-01 : f32
    %20 = vector.broadcast %cst_13 : f32 to vector<8x128xf32>
    %21 = arith.mulf %20, %17 : vector<8x128xf32>
    %22 = arith.select %19, %17, %21 : vector<8x128xi1>, vector<8x128xf32>
    %c0_14 = arith.constant 0 : index
    %c0_15 = arith.constant 0 : index
    %23 = vector.load %arg6[%c0_14, %c0_15] : memref<128x128xbf16, #tpu.memory_space<vmem>>, vector<128x128xbf16>
    %c0_16 = arith.constant 0 : index
    %c0_17 = arith.constant 0 : index
    %24 = vector.load %arg7[%c0_16, %c0_17] : memref<1x128xf32, #tpu.memory_space<vmem>>, vector<1x128xf32>
    %25 = arith.truncf %22 : vector<8x128xf32> to vector<8x128xbf16>
    %cst_18 = arith.constant dense<0.000000e+00> : vector<8x128xf32>
    %26 = tpu.matmul %25, %23, %cst_18 {dimension_numbers = #tpu.dot_dimension_numbers<[1], [0], [0], [1], [0, 0, 1, 1], [], []>} : vector<8x128xbf16>, vector<128x128xbf16>, vector<8x128xf32> -> vector<8x128xf32>
    %27 = vector.broadcast %24 : vector<1x128xf32> to vector<8x128xf32>
    %28 = arith.addf %26, %27 : vector<8x128xf32>
    %cst_19 = arith.constant 0.000000e+00 : f32
    %29 = vector.broadcast %cst_19 : f32 to vector<8x128xf32>
    %30 = arith.cmpf ogt, %28, %29 : vector<8x128xf32>
    %cst_20 = arith.constant 2.000000e-01 : f32
    %31 = vector.broadcast %cst_20 : f32 to vector<8x128xf32>
    %32 = arith.mulf %31, %28 : vector<8x128xf32>
    %33 = arith.select %30, %28, %32 : vector<8x128xi1>, vector<8x128xf32>
    %c0_21 = arith.constant 0 : index
    %c0_22 = arith.constant 0 : index
    %34 = vector.load %arg8[%c0_21, %c0_22] : memref<128x128xbf16, #tpu.memory_space<vmem>>, vector<128x128xbf16>
    %c0_23 = arith.constant 0 : index
    %c0_24 = arith.constant 0 : index
    %35 = vector.load %arg9[%c0_23, %c0_24] : memref<1x128xf32, #tpu.memory_space<vmem>>, vector<1x128xf32>
    %36 = arith.truncf %33 : vector<8x128xf32> to vector<8x128xbf16>
    %cst_25 = arith.constant dense<0.000000e+00> : vector<8x128xf32>
    %37 = tpu.matmul %36, %34, %cst_25 {dimension_numbers = #tpu.dot_dimension_numbers<[1], [0], [0], [1], [0, 0, 1, 1], [], []>} : vector<8x128xbf16>, vector<128x128xbf16>, vector<8x128xf32> -> vector<8x128xf32>
    %38 = vector.broadcast %35 : vector<1x128xf32> to vector<8x128xf32>
    %39 = arith.addf %37, %38 : vector<8x128xf32>
    %cst_26 = arith.constant 0.000000e+00 : f32
    %40 = vector.broadcast %cst_26 : f32 to vector<8x128xf32>
    %41 = arith.cmpf ogt, %39, %40 : vector<8x128xf32>
    %cst_27 = arith.constant 2.000000e-01 : f32
    %42 = vector.broadcast %cst_27 : f32 to vector<8x128xf32>
    %43 = arith.mulf %42, %39 : vector<8x128xf32>
    %44 = arith.select %41, %39, %43 : vector<8x128xi1>, vector<8x128xf32>
    %c0_28 = arith.constant 0 : index
    %c0_29 = arith.constant 0 : index
    %45 = vector.load %arg10[%c0_28, %c0_29] : memref<128x16xbf16, #tpu.memory_space<vmem>>, vector<128x16xbf16>
    %c0_30 = arith.constant 0 : index
    %c0_31 = arith.constant 0 : index
    %46 = vector.load %arg11[%c0_30, %c0_31] : memref<1x16xf32, #tpu.memory_space<vmem>>, vector<1x16xf32>
    %47 = arith.truncf %44 : vector<8x128xf32> to vector<8x128xbf16>
    %cst_32 = arith.constant dense<0.000000e+00> : vector<8x16xf32>
    %48 = tpu.matmul %47, %45, %cst_32 {dimension_numbers = #tpu.dot_dimension_numbers<[1], [0], [0], [1], [0, 0, 1, 1], [], []>} : vector<8x128xbf16>, vector<128x16xbf16>, vector<8x16xf32> -> vector<8x16xf32>
    %49 = vector.broadcast %46 : vector<1x16xf32> to vector<8x16xf32>
    %50 = arith.addf %48, %49 : vector<8x16xf32>
    %c0_33 = arith.constant 0 : index
    %c0_34 = arith.constant 0 : index
    %51 = vector.load %arg12[%c0_33, %c0_34] : memref<8x16xf32, #tpu.memory_space<vmem>>, vector<8x16xf32>
    tpu.vector_store %arg12[%c0_33, %c0_34], %50 {strides = array<i32>} : memref<8x16xf32, #tpu.memory_space<vmem>>, vector<8x16xf32>,
    return
  }
  func.func @transform_0(%arg0: i32) -> (i32, i32) {
    %c0_i32 = arith.constant 0 : i32
    %c0_i32_0 = arith.constant 0 : i32
    return %arg0, %c0_i32 : i32, i32
  }
  func.func @transform_1(%arg0: i32) -> (i32, i32) {
    %c0_i32 = arith.constant 0 : i32
    %c0_i32_0 = arith.constant 0 : i32
    %c0_i32_1 = arith.constant 0 : i32
    return %c0_i32, %c0_i32_0 : i32, i32
  }
  func.func @transform_2(%arg0: i32) -> (i32, i32) {
    %c0_i32 = arith.constant 0 : i32
    %c0_i32_0 = arith.constant 0 : i32
    %c0_i32_1 = arith.constant 0 : i32
    return %c0_i32, %c0_i32_0 : i32, i32
  }
  func.func @transform_3(%arg0: i32) -> (i32, i32) {
    %c0_i32 = arith.constant 0 : i32
    %c0_i32_0 = arith.constant 0 : i32
    %c0_i32_1 = arith.constant 0 : i32
    return %c0_i32, %c0_i32_0 : i32, i32
  }
  func.func @transform_4(%arg0: i32) -> (i32, i32) {
    %c0_i32 = arith.constant 0 : i32
    %c0_i32_0 = arith.constant 0 : i32
    %c0_i32_1 = arith.constant 0 : i32
    return %c0_i32, %c0_i32_0 : i32, i32
  }
  func.func @transform_5(%arg0: i32) -> (i32, i32) {
    %c0_i32 = arith.constant 0 : i32
    %c0_i32_0 = arith.constant 0 : i32
    %c0_i32_1 = arith.constant 0 : i32
    return %c0_i32, %c0_i32_0 : i32, i32
  }
  func.func @transform_6(%arg0: i32) -> (i32, i32) {
    %c0_i32 = arith.constant 0 : i32
    %c0_i32_0 = arith.constant 0 : i32
    %c0_i32_1 = arith.constant 0 : i32
    return %c0_i32, %c0_i32_0 : i32, i32
  }
  func.func @transform_7(%arg0: i32) -> (i32, i32) {
    %c0_i32 = arith.constant 0 : i32
    %c0_i32_0 = arith.constant 0 : i32
    %c0_i32_1 = arith.constant 0 : i32
    return %c0_i32, %c0_i32_0 : i32, i32
  }
  func.func @transform_8(%arg0: i32) -> (i32, i32) {
    %c0_i32 = arith.constant 0 : i32
    %c0_i32_0 = arith.constant 0 : i32
    %c0_i32_1 = arith.constant 0 : i32
    return %c0_i32, %c0_i32_0 : i32, i32
  }
  func.func @transform_9(%arg0: i32) -> (i32, i32) {
    %c0_i32 = arith.constant 0 : i32
    %c0_i32_0 = arith.constant 0 : i32
    %c0_i32_1 = arith.constant 0 : i32
    return %c0_i32, %c0_i32_0 : i32, i32
  }
  func.func @transform_10(%arg0: i32) -> (i32, i32) {
    %c0_i32 = arith.constant 0 : i32
    %c0_i32_0 = arith.constant 0 : i32
    %c0_i32_1 = arith.constant 0 : i32
    return %c0_i32, %c0_i32_0 : i32, i32
  }
  func.func @transform_11(%arg0: i32) -> (i32, i32) {
    %c0_i32 = arith.constant 0 : i32
    %c0_i32_0 = arith.constant 0 : i32
    return %arg0, %c0_i32 : i32, i32
  }
}

</mosaic_0001>

<bundles_post_ra>
// kernel: tpu_custom_call.1
= control target key start
LH: loop header
LB: loop body
LE: loop exit
PB: predicated region body
PF: predicated region fallthrough
CT: control target
= control target key end

     0   :  { %s1914_s0 = inlined_call_operand.hbm [shape: f32[16,16], index: 0, kind: input, shape index: {}]   ;;  %s1915_s1 = inlined_call_operand.vmem [shape: bf16[16,128], index: 1, kind: input, shape index: {}]   ;;  %s1916_s2 = inlined_call_operand.hbm [shape: f32[1,128], index: 2, kind: input, shape index: {}]   ;;  %s1917_s3 = inlined_call_operand.vmem [shape: bf16[128,128], index: 3, kind: input, shape index: {}]   ;;  %s1918_s4 = inlined_call_operand.hbm [shape: f32[1,128], index: 4, kind: input, shape index: {}]   ;;  %s1919_s5 = inlined_call_operand.hbm [shape: bf16[128,128], index: 5, kind: input, shape index: {}]   ;;  %s1920_s6 = inlined_call_operand.hbm [shape: f32[1,128], index: 6, kind: input, shape index: {}]   ;;  %s1921_s7 = inlined_call_operand.hbm [shape: bf16[128,128], index: 7, kind: input, shape index: {}]   ;;  %s1922_s8 = inlined_call_operand.hbm [shape: f32[1,128], index: 8, kind: input, shape index: {}]   ;;  %s1923_s9 = inlined_call_operand.vmem [shape: bf16[128,16], index: 9, kind: input, shape index: {}]   ;;  %s1924_s10 = inlined_call_operand.vmem [shape: f32[1,16], index: 10, kind: input, shape index: {}]   ;;  %s1925_s11 = inlined_call_operand.hbm [shape: f32[16,16], index: 11, kind: output, shape index: {}]  }
   0x1   :  { %1926 = sst [smem:[#allocation20_spill]] %s1916_s2 }
   0x2   :  { %1927 = sst [smem:[#allocation21_spill]] %s1918_s4 }
   0x3   :  { %1928 = sst [smem:[#allocation22_spill]] %s1919_s5 }
   0x4   :  { %1929 = sst [smem:[#allocation23_spill]] %s1920_s6 }
   0x5   :  { %1930 = sst [smem:[#allocation24_spill]] %s1921_s7 }
   0x6   :  { %1931 = sst [smem:[#allocation25_spill]] %s1922_s8 }
   0x7   :  { %16 = vsyncpa [#allocation3], 0 }
   0x8   :  { %18 = vsyncpa [#allocation3 + $0x1], 0 }
   0x9   :  { %19 = vsyncpa [#allocation6], 0 }
   0xa   :  { %20 = vsyncpa [#allocation9], 0 }
   0xb   :  { %21 = vsyncpa [#allocation12], 0 }
   0xc   :  { %22 = vsyncpa [#allocation4], 0 }
   0xd   :  { %24 = vsyncpa [#allocation4 + $0x1], 0  ;;  %s1673_s17 = smov 0   ;;  %s1675_s18 = smov 0  }
   0xe   :  { %s1677_s19 = smov 0   ;;  %s1679_s20 = smov 0  }
   0xf LB: > { %s1932_s2 = sld [smem:[#allocation20_spill]]  ;;  %s1697_s24 = sadd.s32 4294967295, %s1603_s20   ;;  %s1603_s20 = sphi %s1679_s20, %s1949_s20   ;;  %s1599_s19 = sphi %s1677_s19, %s1948_s19   ;;  %s1595_s18 = sphi %s1675_s18, %s1947_s18   ;;  %s1591_s17 = sphi %s1673_s17, %s1946_s17  }
  0x10   : > { %p1012_p0 = scmp.ge.s32.totalorder %s1603_s20, 1  ;;  %p51_p1 = scmp.eq.s32.totalorder %s1697_s24, 0 }
  0x11   : > { %p297_p2 = scmp.lt.s32.totalorder %s1603_s20, 3  ;;  %s1605_s26 = smov [#allocation5]  }
  0x12   : > { %s314_s27 = sshll.u32 %s1605_s26, 4  ;;  %s1934_s5 = sld [smem:[#allocation22_spill]]  ;;  %s315_s27 = int_to_ptr.vmem [resolvable:$true] %s314_s27 }
  0x13   : > { %p1702_p3 = pnand %p1012_p0, %p297_p2  ;;  %s1606_s13 = smov [#allocation8]  }
  0x14   : > { %s340_s14 = sshll.u32 %s1606_s13, 4  ;;  %s1607_s15 = smov 64   ;;  %s341_s14 = int_to_ptr.vmem [resolvable:$true] %s340_s14 }
  0x15   : > { %s312_s23 = sshll.u32 %s1932_s2, 4  ;;  %p1229_p5 = pneg %p1702_p3  ;;  %s313_s23 = int_to_ptr.hbm [resolvable:$true] %s312_s23 }
  0x16   : > { %s1608_s16 = smov 4   ;;  %s1936_s7 = sld [smem:[#allocation24_spill]] }
  0x17   : > { %p1714_p6 = pnand %p1229_p5, %p51_p1  ;;  %s1609_s28 = smov [#allocation11]  }
  0x18   : > { %s338_s30 = sshll.u32 %s1934_s5, 4  ;;  %s366_s29 = sshll.u32 %s1609_s28, 4  ;;  %s339_s30 = int_to_ptr.hbm [resolvable:$true] %s338_s30  ;;  %s367_s29 = int_to_ptr.vmem [resolvable:$true] %s366_s29 }
  0x19   : > { %1232 = dma.hbm_to_vmem [thread:$0]  (!%p1714_p6), %s313_s23, 16, %s315_s27, [#allocation6]  }
  0x1a   : > { %1238 = dma.hbm_to_vmem [thread:$0]  (!%p1714_p6), %s339_s30, 1024, %s341_s14, [#allocation9], %s1607_s15, %s1607_s15, %s1608_s16  }
  0x1b   : > { %s1937_s4 = sld [smem:[#allocation21_spill]]  ;;  %s1610_s23 = smov [#allocation7]  }
  0x1c   : > { %s364_s26 = sshll.u32 %s1936_s7, 4  ;;  %s329_s27 = sshll.u32 %s1610_s23, 4  ;;  %s365_s26 = int_to_ptr.hbm [resolvable:$true] %s364_s26  ;;  %s330_s27 = int_to_ptr.vmem [resolvable:$true] %s329_s27 }
  0x1d   : > { %1244 = dma.hbm_to_vmem [thread:$0]  (!%p1714_p6), %s365_s26, 1024, %s367_s29, [#allocation12], %s1607_s15, %s1607_s15, %s1608_s16  }
  0x1e   : > { %s1938_s6 = sld [smem:[#allocation23_spill]]  ;;  %s1611_s16 = smov [#allocation10]  }
  0x1f   : > { %s1939_s8 = sld [smem:[#allocation25_spill]]  ;;  %s355_s22 = sshll.u32 %s1611_s16, 4  ;;  %s356_s22 = int_to_ptr.vmem [resolvable:$true] %s355_s22 }
  0x20   : > { %s1612_s26 = smov [#allocation13]   ;;  %s1011_s29 = sadd.s32 4294967294, %s1603_s20  }
  0x21   : > { %s327_s13 = sshll.u32 %s1937_s4, 4  ;;  %s381_s28 = sshll.u32 %s1612_s26, 4  ;;  %s328_s13 = int_to_ptr.hbm [resolvable:$true] %s327_s13  ;;  %s382_s28 = int_to_ptr.vmem [resolvable:$true] %s381_s28 }
  0x22   : > { %1235 = dma.hbm_to_vmem [thread:$0]  (!%p1714_p6), %s328_s13, 16, %s330_s27, [#allocation6]  }
  0x23   : > { %s1744_s13 = sadd.s32 1, %s1603_s20   ;;  %s37_s27 = sadd.s32 1, %s1599_s19 }
  0x24   : > { %s353_s21 = sshll.u32 %s1938_s6, 4  ;;  %s34_s23 = ssub.s32 %s1603_s20, %s1744_s13  ;;  %s354_s21 = int_to_ptr.hbm [resolvable:$true] %s353_s21 }
  0x25   : > { %s379_s15 = sshll.u32 %s1939_s8, 4  ;;  %p35_p7 = scmp.eq.s32.totalorder %s34_s23, 0  ;;  %s380_s15 = int_to_ptr.hbm [resolvable:$true] %s379_s15 }
  0x26   : > { %1241 = dma.hbm_to_vmem [thread:$0]  (!%p1714_p6), %s354_s21, 16, %s356_s22, [#allocation9]  }
  0x27   : > { %1247 = dma.hbm_to_vmem [thread:$0]  (!%p1714_p6), %s380_s15, 16, %s382_s28, [#allocation12]  }
  0x28   : > { %p44_p8 = scmp.ne.s32.totalorder %s1599_s19, %s1595_s18  ;;  %p45_p9 = scmp.eq.s32.totalorder %s1603_s20, 0 }
  0x29   : > { %p50_p10 = scmp.ne.s32.totalorder %s1595_s18, %s1591_s17  ;;  %p284_p13 = scmp.eq.s32.totalorder %s1697_s24, 1 }
  0x2a   : > { %s1755_s30 = scalar_select %p35_p7, %s1599_s19, %s37_s27  }
  0x2b   : > { %p1757_p11 = por %p45_p9, %p44_p8  ;;  %p1763_p12 = por %p51_p1, %p50_p10 }
  0x2c   : > { %p290_p0 = scmp.eq.s32.totalorder %s1011_s29, 1  ;;  %p1262_p2 = scmp.lt.s32.totalorder %s1603_s20, 2 }
  0x2d   : > { %s398_s21 = sand.u32 1, %s1599_s19   ;;  %p1770_p5 = por %p284_p13, %p44_p8 }
  0x2e   : > { %p1774_p6 = por %p290_p0, %p50_p10  ;;  %s1020_s15 = sshll.u32 %s398_s21, 3 }
  0x2f   : > { %s1021_s16 = sshll.u32 %s1603_s20, 3  ;;  %s402_s23 = scalar_lea.vmem [#allocation2], %s1020_s15 }
  0x30   : > { %s406_s28 = scalar_lea.hbm %s1914_s0, %s1021_s16  ;;  %s410_s27 = sshll.u32 %s402_s23, 4  ;;  %s411_s27 = int_to_ptr.vmem [resolvable:$true] %s410_s27 }
  0x31   : > { %s408_s4 = sshll.u32 %s406_s28, 4  ;;  %p1784_p7 = pnand %p1262_p2, %p1757_p11  ;;  %s409_s4 = int_to_ptr.hbm [resolvable:$true] %s408_s4 }
  0x32   : > { %s399_s6 = scalar_lea.sflag [#allocation3], %s398_s21  ;;  %s1495_s7 = sshra.s32 %s409_s4, 4  ;;  %s1496_s7 = int_to_ptr.hbm [resolvable:$true] %s1495_s7 }
  0x33   : > { %s1497_s8 = scalar_lea.hbm %s1496_s7, 8  ;;  %p1499_p9 = pneg %p1784_p7 }
  0x34   : > { %p1498_p8 = scmp.ne.s32.totalorder %s1496_s7, %s1497_s8  ;;  %s1502_s22 = scalar_lea.hbm %s1914_s0, 16 }
  0x35   : > { %p1503_p11 = scmp.lt.s32.totalorder %s1496_s7, %s1914_s0  ;;  %p1504_p0 = scmp.lt.s32.totalorder %s1502_s22, %s1497_s8 }
  0x36   : > { %p1500_p10 = pnand %p1499_p9, %p1498_p8 }
  0x37   : > { %p1505_p2 = por %p1504_p0, %p1503_p11 }
  0x38   : > { %p1501_p13 = pneg %p1500_p10 }
  0x3a   : > { %p1506_p4 = pnand %p1505_p2, %p1501_p13 }
  0x3c   : > { %1509 = shalt.err (!%p1506_p4)
}
  0x3d   : > { %1251 = dma.hbm_to_vmem [thread:$0]  (!%p1784_p7), %s409_s4, 128, %s411_s27, %s399_s6  }
  0x3e   : > { %419 = sbr.rel (%p1702_p3) target bundleno = 756 (0x2f4), region = 64  ;;  %s1801_s21 = sand.u32 (!%p1702_p3), 1, %s1595_s18  }
  0x3f   : > { %s1023_s28 = sshll.u32 (!%p1702_p3), %s1801_s21, 3  ;;  %s422_s23 = scalar_lea.sflag (!%p1702_p3), [#allocation3], %s1801_s21 }
  0x40   : > { %s425_s7 = scalar_lea.vmem (!%p1702_p3), [#allocation2], %s1023_s28 }
  0x43   : > { %1570 = dma.done.wait (%p1763_p12), %s422_s23, 128  }
  0x44   : > { %1572 = vsyncadd (%p1763_p12), %s422_s23, 4294967168 }
  0x45   : > { %1574 = dma.done.wait (%p51_p1), [#allocation6], 32  }
  0x46   : > { %1576 = vsyncadd (%p51_p1), [#allocation6], 4294967264 }
  0x47   : > { %1578 = dma.done.wait (%p51_p1), [#allocation9], 1040  }
  0x48   : > { %1580 = vsyncadd (%p51_p1), [#allocation9], 4294966256 }
  0x49   : > { %1582 = dma.done.wait (%p51_p1), [#allocation12], 1040  }
  0x4a   : > { %1584 = vsyncadd (%p51_p1), [#allocation12], 4294966256  ;;  %v1168_v0 = vld [vmem:[%s1915_s1] sm:$0xff]  ;;  %v1176_v2 = vld [vmem:[%s1917_s3 + $0x38] sm:$0xff]  ;;  %vm510_vm0 = vcmask 130048   ;;  %s1165_s29 = sshll.u32 %s1697_s24, 3 }
  0x4b   : > { %v496_v1 = vld [vmem:[%s425_s7] sm:$0xff]  ;;  %521 = vmatpush.bf16.msra.mxu0 %v1168_v0  ;;  %599 = vmatpush.bf16.msra.mxu1 %v1176_v2  ;;  %v1175_v4 = vld [vmem:[%s1917_s3 + $0x30] sm:$0xff]  ;;  %v1172_v7 = vld [vmem:[%s1917_s3 + $0x18] sm:$0xff]  ;;  %s879_s22 = scalar_lea.hbm %s1925_s11, %s1165_s29  ;;  %s494_s23 = scalar_lea.vmem [#allocation14], %s1023_s28 }
  0x4c   : > { %v500_v3 = vpack.c.bf16 %v496_v1, %v496_v1  ;;  %v1174_v5 = vld [vmem:[%s1917_s3 + $0x28] sm:$0xff]  ;;  %v1173_v6 = vld [vmem:[%s1917_s3 + $0x20] sm:$0xff]  ;;  %v1171_v8 = vld [vmem:[%s1917_s3 + $0x10] sm:$0xff]  ;;  %s881_s7 = sshll.u32 %s494_s23, 4  ;;  %s883_s4 = sshll.u32 %s879_s22, 4  ;;  %s882_s7 = int_to_ptr.vmem [resolvable:$true] %s881_s7  ;;  %s884_s4 = int_to_ptr.hbm [resolvable:$true] %s883_s4 }
  0x4d   : > { %v1170_v9 = vld [vmem:[%s1917_s3 + $0x8] sm:$0xff]  ;;  %v1169_v10 = vld [vmem:[%s1917_s3] sm:$0xff]  ;;  %v1181_v14 = vld [vmem:[#allocation8 + $0x20] sm:$0xff]  ;;  %s869_s24 = scalar_lea.sflag [#allocation4], %s1801_s21  ;;  %s1539_s6 = sshra.s32 %s884_s4, 4  ;;  %s1540_s6 = int_to_ptr.hbm [resolvable:$true] %s1539_s6 }
  0x4e   : > { %1035 = vmatmul.msk.bf16.vlgmr.msra.gmra.mxu0 %vm510_vm0, %v500_v3  ;;  %v1184_v11 = vld [vmem:[#allocation8 + $0x38] sm:$0xff]  ;;  %v1183_v12 = vld [vmem:[#allocation8 + $0x30] sm:$0xff]  ;;  %v1182_v13 = vld [vmem:[#allocation8 + $0x28] sm:$0xff]  ;;  %s1541_s8 = scalar_lea.hbm %s1540_s6, 8  ;;  %s1545_s28 = scalar_lea.hbm %s1925_s11, 16 }
  0x4f   : > { %600 = vmatpush.bf16.msra.mxu1 %v1175_v4  ;;  %684 = vmatpush.bf16.msra.mxu2 %v1184_v11  ;;  %v1180_v15 = vld [vmem:[#allocation8 + $0x18] sm:$0xff]  ;;  %v1179_v16 = vld [vmem:[#allocation8 + $0x10] sm:$0xff]  ;;  %v1178_v24 = vld [vmem:[#allocation8 + $0x8] sm:$0xff]  ;;  %p1542_p1 = scmp.ne.s32.totalorder %s1540_s6, %s1541_s8  ;;  %p1546_p12 = scmp.lt.s32.totalorder %s1540_s6, %s1925_s11 }
  0x50   : > { %v1310_v17 = vld [vmem:[#allocation5] ss:$0 sm:$0xff]  ;;  %v1177_v25 = vld [vmem:[#allocation8] sm:$0xff]  ;;  %v1191_v27 = vld [vmem:[#allocation11 + $0x30] sm:$0xff]  ;;  %p1547_p7 = scmp.lt.s32.totalorder %s1545_s28, %s1541_s8 }
  0x51   : > { %v1192_v26 = vld [vmem:[#allocation11 + $0x38] sm:$0xff]  ;;  %v1190_v28 = vld [vmem:[#allocation11 + $0x28] sm:$0xff]  ;;  %v1189_v29 = vld [vmem:[#allocation11 + $0x20] sm:$0xff]  ;;  %p1543_p3 = pnand %p1542_p1, %p1770_p5 }
  0x52   : > { %769 = vmatpush.bf16.msra.mxu3 %v1192_v26  ;;  %v1188_v30 = vld [vmem:[#allocation11 + $0x18] sm:$0xff]  ;;  %v1187_v31 = vld [vmem:[#allocation11 + $0x10] sm:$0xff]  ;;  %v1186_v39 = vld [vmem:[#allocation11 + $0x8] sm:$0xff]  ;;  %p1548_p8 = por %p1547_p7, %p1546_p12 }
  0x53   : > { %601 = vmatpush.bf16.msra.mxu1 %v1174_v5  ;;  %685 = vmatpush.bf16.msra.mxu2 %v1183_v12  ;;  %v1311_v32 = vld [vmem:[#allocation7] ss:$0 sm:$0xff]  ;;  %v1185_v40 = vld [vmem:[#allocation11] sm:$0xff]  ;;  %v1198_v43 = vld [vmem:[%s1923_s9 + $0x28] sm:$0xff]  ;;  %p1544_p4 = pneg %p1543_p3 }
  0x54   : > { %v1200_v41 = vld [vmem:[%s1923_s9 + $0x38] sm:$0xff]  ;;  %v1199_v42 = vld [vmem:[%s1923_s9 + $0x30] sm:$0xff]  ;;  %v1197_v44 = vld [vmem:[%s1923_s9 + $0x20] sm:$0xff] }
  0x55   : > { %854 = vmatpush.bf16.msrb.mxu0 %v1200_v41  ;;  %v1196_v45 = vld [vmem:[%s1923_s9 + $0x18] sm:$0xff]  ;;  %v1195_v46 = vld [vmem:[%s1923_s9 + $0x10] sm:$0xff]  ;;  %v1194_v54 = vld [vmem:[%s1923_s9 + $0x8] sm:$0xff]  ;;  %p1549_p9 = pnand %p1548_p8, %p1544_p4 }
  0x56   : > { %770 = vmatpush.bf16.msra.mxu3 %v1191_v27  ;;  %v1312_v47 = vld [vmem:[#allocation10] ss:$0 sm:$0xff]  ;;  %v1193_v55 = vld [vmem:[%s1923_s9] sm:$0xff]  ;;  %v1313_v56 = vld [vmem:[#allocation13] ss:$0 sm:$0xff] }
  0x57   : > { %602 = vmatpush.bf16.msra.mxu1 %v1173_v6  ;;  %686 = vmatpush.bf16.msra.mxu2 %v1182_v13  ;;  %v1314_v63 = vld [vmem:[%s1924_s10] ss:$0 sm:$0xff] }
  0x59   : > { %855 = vmatpush.bf16.msrb.mxu0 %v1199_v42 }
  0x5a   : > { %771 = vmatpush.bf16.msra.mxu3 %v1190_v28 }
  0x5b   : > { %603 = vmatpush.bf16.msra.mxu1 %v1172_v7  ;;  %687 = vmatpush.bf16.msra.mxu2 %v1181_v14 }
  0x5d   : > { %856 = vmatpush.bf16.msrb.mxu0 %v1198_v43 }
  0x5e   : > { %772 = vmatpush.bf16.msra.mxu3 %v1189_v29 }
  0x5f   : > { %604 = vmatpush.bf16.msra.mxu1 %v1171_v8  ;;  %688 = vmatpush.bf16.msra.mxu2 %v1180_v15 }
  0x61   : > { %857 = vmatpush.bf16.msrb.mxu0 %v1197_v44 }
  0x62   : > { %773 = vmatpush.bf16.msra.mxu3 %v1188_v30 }
  0x63   : > { %605 = vmatpush.bf16.msra.mxu1 %v1170_v9  ;;  %689 = vmatpush.bf16.msra.mxu2 %v1179_v16 }
  0x65   : > { %858 = vmatpush.bf16.msrb.mxu0 %v1196_v45 }
  0x66   : > { %774 = vmatpush.bf16.msra.mxu3 %v1187_v31 }
  0x67   : > { %606 = vmatpush.bf16.msra.mxu1 %v1169_v10  ;;  %690 = vmatpush.bf16.msra.mxu2 %v1178_v24 }
  0x69   : > { %859 = vmatpush.bf16.msrb.mxu0 %v1195_v46 }
  0x6a   : > { %775 = vmatpush.bf16.msra.mxu3 %v1186_v39 }
  0x6b   : > { %691 = vmatpush.bf16.msra.mxu2 %v1177_v25 }
  0x6d   : > { %860 = vmatpush.bf16.msrb.mxu0 %v1194_v54 }
  0x6e   : > { %776 = vmatpush.bf16.msra.mxu3 %v1185_v40 }
  0x71   : > { %861 = vmatpush.bf16.msrb.mxu0 %v1193_v55 }
  0xcb   : > { %v523_v18 = vpop.f32.mrf.mxu0 }
  0xcc   : > { %v524_v19 = vadd.f32 %v1310_v17, %v523_v18 }
  0xce   : > { %v528_v20 = vmul.f32 0.2, %v524_v19  ;;  %vm527_vm1 = vcmp.gt.f32.partialorder %v524_v19, 0.0 }
  0xd0   : > { %v529_v21 = vsel %vm527_vm1, %v524_v19, %v528_v20 }
  0xd1   : > { %v547_v22 = vpack.c.bf16 %v529_v21, %v529_v21 }
  0xd3   : > { %v525_v23 = vpop.f32.mrf.mxu0  ;;  %607 = vmatmul.bf16.vlgmr.msra.gmra.mxu1 %v547_v22 }
 0x150   : > { %v608_v33 = vpop.f32.mrf.mxu1 }
 0x151   : > { %v609_v34 = vadd.f32 %v1311_v32, %v608_v33 }
 0x153   : > { %v613_v35 = vmul.f32 0.2, %v609_v34  ;;  %vm612_vm2 = vcmp.gt.f32.partialorder %v609_v34, 0.0 }
 0x155   : > { %v614_v36 = vsel %vm612_vm2, %v609_v34, %v613_v35 }
 0x156   : > { %v632_v37 = vpack.c.bf16 %v614_v36, %v614_v36 }
 0x158   : > { %v610_v38 = vpop.f32.mrf.mxu1  ;;  %692 = vmatmul.bf16.vlgmr.msra.gmra.mxu2 %v632_v37 }
 0x1db   : > { %v693_v48 = vpop.f32.mrf.mxu2 }
 0x1dc   : > { %v694_v49 = vadd.f32 %v1312_v47, %v693_v48 }
 0x1de   : > { %v698_v50 = vmul.f32 0.2, %v694_v49  ;;  %vm697_vm3 = vcmp.gt.f32.partialorder %v694_v49, 0.0 }
 0x1e0   : > { %v699_v51 = vsel %vm697_vm3, %v694_v49, %v698_v50 }
 0x1e1   : > { %v717_v52 = vpack.c.bf16 %v699_v51, %v699_v51 }
 0x1e3   : > { %v695_v53 = vpop.f32.mrf.mxu2  ;;  %777 = vmatmul.bf16.vlgmr.msra.gmra.mxu3 %v717_v52 }
 0x266   : > { %v778_v57 = vpop.f32.mrf.mxu3 }
 0x267   : > { %v779_v58 = vadd.f32 %v1313_v56, %v778_v57 }
 0x269   : > { %vm782_vm4 = vcmp.gt.f32.partialorder %v779_v58, 0.0  ;;  %v783_v59 = vmul.f32 0.2, %v779_v58 }
 0x26b   : > { %v784_v60 = vsel %vm782_vm4, %v779_v58, %v783_v59 }
 0x26c   : > { %v802_v61 = vpack.c.bf16 %v784_v60, %v784_v60 }
 0x26e   : > { %v780_v62 = vpop.f32.mrf.mxu3  ;;  %862 = vmatmul.bf16.vlgmr.msrb.gmra.mxu0 %v802_v61 }
 0x2eb   : > { %v863_v0 = vpop.f32.mrf.mxu0 }
 0x2ec   : > { %v864_v1 = vadd.f32 %v1314_v63, %v863_v0 }
 0x2ee   : > { %867 = vst.msk [vmem:[%s494_s23] sm:$0xff] %vm510_vm0, %v864_v1 }
 0x2ef   : > { %1552 = shalt.err (!%p1549_p9)
}
 0x2f0   : > { %1227 = dma.vmem_to_hbm [thread:$0]  (%p1770_p5), %s882_s7, 128, %s884_s4, %s869_s24  }
 0x2f3   : > { %v865_v2 = vpop.f32.mrf.mxu0 }
 0x2f4 PF: > { %s895_s21 = sand.u32 1, %s1591_s17   ;;  %p1945_p10 = scmp.ge.s32.totalorder %s1603_s20, 2 }
 0x2f5   : > { %s896_s15 = scalar_lea.sflag [#allocation4], %s895_s21 }
 0x2f6   : > { %p1253_p13 = pnand %p1945_p10, %p1774_p6 }
 0x2f8   : > { %p1254_p11 = pneg %p1253_p13 }
 0x2fa   : > { %1586 = dma.done.wait (%p1254_p11), %s896_s15, 128  }
 0x2fb   : > { %1588 = vsyncadd (%p1254_p11), %s896_s15, 4294967168  ;;  %p27_p0 = scmp.ge.s32.totalorder %s1744_s13, 4   ;;  %s1946_s17 = smov %s1595_s18 }
 0x2fc   : > { %s1947_s18 = smov %s1599_s19  ;;  %s1948_s19 = smov %s1755_s30 }
 0x2fd   : > { %s1949_s20 = smov %s1744_s13  ;;  %29 = sbr.rel (!%p27_p0) target bundleno = 15 (0xf), region = 133 }
 0x302   :  { %902 = vsyncpa [#allocation3], 1 }
 0x303   :  { %904 = vsyncpa [#allocation3 + $0x1], 1 }
 0x304   :  { %905 = vsyncpa [#allocation6], 1 }
 0x305   :  { %906 = vsyncpa [#allocation9], 1 }
 0x306   :  { %907 = vsyncpa [#allocation12], 1 }
 0x307   :  { %908 = vsyncpa [#allocation4], 1 }
 0x308   :  { %910 = vsyncpa [#allocation4 + $0x1], 1 }

</bundles_post_ra>
